<compile_context>
chip_gen: v6e
topology: v6e:2x2x1
jax: 0.10.0
libtpu: 0.0.40
codegen_flags: <defaults>
</compile_context>

<pallas_src>
import math
import functools

import jax
import jax.numpy as jnp
from jax.experimental import pallas as pl
from jax.experimental.pallas import tpu as pltpu

D_MODEL = 32
NUM_HEADS = 4
D_FF = 64
D_K = D_MODEL // NUM_HEADS
LN_EPS = 1e-5


def _layernorm(x, gamma, beta):
    # PyTorch nn.LayerNorm over the last dim, biased variance, eps=1e-5.
    mu = jnp.mean(x, axis=-1, keepdims=True)
    xc = x - mu
    var = jnp.mean(xc * xc, axis=-1, keepdims=True)
    inv = jax.lax.rsqrt(var + LN_EPS)
    return xc * inv * gamma + beta


def encoder_layer_kernel(x_ref, wqkv_ref, wo_ref, w1_ref, w2_ref, vec_ref,
                         out_ref, *, nb, s):
    rows = nb * s
    x = x_ref[...]                                       # (rows, D)

    # packed (1, N) parameter vectors: one (8, 128) slab, static slices.
    vec = vec_ref[...]
    b_qkv = vec[0:1, :3 * D_MODEL]
    bo = vec[1:2, :D_MODEL]
    g1 = vec[2:3, :D_MODEL]
    be1 = vec[3:4, :D_MODEL]
    b1 = vec[4:5, :D_FF]
    b2 = vec[5:6, :D_MODEL]
    g2 = vec[6:7, :D_MODEL]
    be2 = vec[7:8, :D_MODEL]

    # ---- fused Q/K/V projection over the whole slab (M = rows) -----------
    qkv = jnp.dot(x, wqkv_ref[...],
                  preferred_element_type=jnp.float32) + b_qkv   # (rows, 3D)

    # ---- head-batched self-attention: batch dim = NUM_HEADS * nb ----------
    def split_heads(m):                                  # (rows, D) -> (H*nb, s, d_k)
        heads = [m[:, h * D_K:(h + 1) * D_K] for h in range(NUM_HEADS)]
        return jnp.stack(heads, axis=0).reshape(NUM_HEADS * nb, s, D_K)

    q_h = split_heads(qkv[:, 0 * D_MODEL:1 * D_MODEL])
    k_h = split_heads(qkv[:, 1 * D_MODEL:2 * D_MODEL])
    v_h = split_heads(qkv[:, 2 * D_MODEL:3 * D_MODEL])

    scale = 1.0 / math.sqrt(D_K)
    sc = jnp.einsum('bqd,bkd->bqk', q_h, k_h,
                    preferred_element_type=jnp.float32) * scale  # (H*nb, s, s)
    sc = sc - jnp.max(sc, axis=-1, keepdims=True)
    p = jnp.exp(sc)
    p = p / jnp.sum(p, axis=-1, keepdims=True)           # exact softmax (torch parity)
    ctx = jnp.einsum('bqk,bkd->bqd', p, v_h,
                     preferred_element_type=jnp.float32)  # (H*nb, s, d_k)

    # reassemble heads along lanes, then ONE (rows, D) @ (D, D) output proj.
    ctx = ctx.reshape(NUM_HEADS, rows, D_K)
    ctx_all = jnp.concatenate([ctx[h] for h in range(NUM_HEADS)], axis=-1)
    attn_out = jnp.dot(ctx_all, wo_ref[...],
                       preferred_element_type=jnp.float32) + bo

    # TODO(synk): dropout (p=0.1) is identity here (eval-mode semantics).
    # residual + LayerNorm1
    x1 = _layernorm(x + attn_out, g1, be1)

    # ---- position-wise feed-forward over the whole slab -------------------
    h1 = jnp.dot(x1, w1_ref[...], preferred_element_type=jnp.float32) + b1
    h1 = jnp.maximum(h1, 0.0)
    ff = jnp.dot(h1, w2_ref[...], preferred_element_type=jnp.float32) + b2

    # residual + LayerNorm2
    out_ref[...] = _layernorm(x1 + ff, g2, be2)


def _tensorcores_per_chip() -> int:
    """2 on v7x (2 TensorCores/chip), 1 on v5e/v6e/unknown."""
    try:
        kind = jax.devices()[0].device_kind.lower()
    except Exception:
        return 1
    return 2 if "v7" in kind else 1


def encoder_layer(x, params, *, target_rows=2048):
    """x: (B, S, d_model). params in PyTorch convention (W: (out,in), b: (out,))."""
    B, S, D = x.shape
    assert D == D_MODEL
    assert S % 8 == 0, "seq_len must be a multiple of 8 (sublane group)"

    (wq, bq, wk, bk, wv, bv, wo, bo,
     g1, be1, w1, b1, w2, b2, g2, be2) = params

    # ---- host-side weight prep: transpose to (in, out), fuse Q/K/V --------
    w_qkv = jnp.concatenate([wq.T, wk.T, wv.T], axis=1)          # (D, 3D)
    wo_t = wo.T                                                  # (D, D)
    w1_t = w1.T                                                  # (D, D_FF)
    w2_t = w2.T                                                  # (D_FF, D)

    # pack all (1, N) vectors into one (8, 128) f32 slab (one DMA, no padding waste)
    vec = jnp.zeros((8, 128), jnp.float32)
    vec = vec.at[0, :3 * D_MODEL].set(jnp.concatenate([bq, bk, bv], axis=0))
    vec = vec.at[1, :D_MODEL].set(bo)
    vec = vec.at[2, :D_MODEL].set(g1)
    vec = vec.at[3, :D_MODEL].set(be1)
    vec = vec.at[4, :D_FF].set(b1)
    vec = vec.at[5, :D_MODEL].set(b2)
    vec = vec.at[6, :D_MODEL].set(g2)
    vec = vec.at[7, :D_MODEL].set(be2)

    # ---- choose sequences-per-step (nb): big slabs, bounded score memory ---
    # per-step score tensor is NUM_HEADS * nb * S * S f32; keep it <= ~8 MiB.
    rows_budget = min(target_rows, max(S, (8 * 1024 * 1024) // (16 * S)))
    nb = min(B, max(1, rows_budget // S))
    n_steps = pl.cdiv(B, nb)

    # v7x only: force >=2 parallel grid steps so both TensorCores get work,
    # but only when each step still gets meaningful work (>=128 rows).
    if n_steps < 2 and B >= 2 and _tensorcores_per_chip() >= 2:
        nb_split = pl.cdiv(B, 2)
        if nb_split * S >= 128:
            nb = nb_split
            n_steps = pl.cdiv(B, nb)

    B_pad = n_steps * nb
    if B_pad != B:
        x = jnp.concatenate([x, jnp.zeros((B_pad - B, S, D), x.dtype)], axis=0)

    rows = nb * S
    x2 = x.reshape(B_pad * S, D)                                 # lane-friendly 2-D slab

    def full_spec(shape):
        return pl.BlockSpec(shape, lambda i: (0, 0))

    in_specs = [
        pl.BlockSpec((rows, D), lambda i: (i, 0)),               # x slab
        full_spec((D, 3 * D_MODEL)),                             # W_qkv (in, out)
        full_spec((D, D)),                                       # Wo^T
        full_spec((D, D_FF)),                                    # W1^T
        full_spec((D_FF, D)),                                    # W2^T
        full_spec((8, 128)),                                     # packed bias/LN vectors
    ]

    out = pl.pallas_call(
        functools.partial(encoder_layer_kernel, nb=nb, s=S),
        out_shape=jax.ShapeDtypeStruct((B_pad * S, D), jnp.float32),
        grid_spec=pltpu.PrefetchScalarGridSpec(
            num_scalar_prefetch=0,
            grid=(n_steps,),
            in_specs=in_specs,
            out_specs=pl.BlockSpec((rows, D), lambda i: (i, 0)),
        ),
        compiler_params=pltpu.CompilerParams(
            dimension_semantics=("parallel",),
            vmem_limit_bytes=32 * 1024 * 1024,
        ),
    )(x2, w_qkv, wo_t, w1_t, w2_t, vec)

    return out.reshape(B_pad, S, D)[:B]


def encoder_layer_ref(x, params):
    """Pure-JAX reference matching the PyTorch module (eval mode)."""
    (wq, bq, wk, bk, wv, bv, wo, bo,
     g1, be1, w1, b1, w2, b2, g2, be2) = params
    B, S, D = x.shape
    hp = jax.lax.Precision.HIGHEST

    q = jnp.dot(x, wq.T, precision=hp) + bq
    k = jnp.dot(x, wk.T, precision=hp) + bk
    v = jnp.dot(x, wv.T, precision=hp) + bv

    def split(t):
        return t.reshape(B, S, NUM_HEADS, D_K).transpose(0, 2, 1, 3)

    qh, kh, vh = split(q), split(k), split(v)
    sc = jnp.einsum('bhqd,bhkd->bhqk', qh, kh, precision=hp) / math.sqrt(D_K)
    p = jax.nn.softmax(sc, axis=-1)
    ctx = jnp.einsum('bhqk,bhkd->bhqd', p, vh, precision=hp)
    ctx = ctx.transpose(0, 2, 1, 3).reshape(B, S, D)
    attn = jnp.dot(ctx, wo.T, precision=hp) + bo

    def ln(t, g, b):
        mu = t.mean(-1, keepdims=True)
        var = ((t - mu) ** 2).mean(-1, keepdims=True)
        return (t - mu) * jax.lax.rsqrt(var + LN_EPS) * g + b

    x1 = ln(x + attn, g1, be1)
    h1 = jnp.maximum(jnp.dot(x1, w1.T, precision=hp) + b1, 0.0)
    ff = jnp.dot(h1, w2.T, precision=hp) + b2
    return ln(x1 + ff, g2, be2)


def init_params(key):
    ks = jax.random.split(key, 6)
    scale = 0.1

    def lin(k, out_dim, in_dim):
        k1, k2 = jax.random.split(k)
        w = scale * jax.random.normal(k1, (out_dim, in_dim), jnp.float32)
        b = scale * jax.random.normal(k2, (out_dim,), jnp.float32)
        return w, b

    wq, bq = lin(ks[0], D_MODEL, D_MODEL)
    wk, bk = lin(ks[1], D_MODEL, D_MODEL)
    wv, bv = lin(ks[2], D_MODEL, D_MODEL)
    wo, bo = lin(ks[3], D_MODEL, D_MODEL)
    w1, b1 = lin(ks[4], D_FF, D_MODEL)
    w2, b2 = lin(ks[5], D_MODEL, D_FF)
    g1 = jnp.ones((D_MODEL,), jnp.float32)
    be1 = jnp.zeros((D_MODEL,), jnp.float32)
    g2 = jnp.ones((D_MODEL,), jnp.float32)
    be2 = jnp.zeros((D_MODEL,), jnp.float32)
    return (wq, bq, wk, bk, wv, bv, wo, bo,
            g1, be1, w1, b1, w2, b2, g2, be2)


if __name__ == "__main__":
    key = jax.random.PRNGKey(0)
    kx, kp = jax.random.split(key)

    B, S = 2, 8
    x = jax.random.normal(kx, (B, S, D_MODEL), jnp.float32)
    params = init_params(kp)

    out = encoder_layer(x, params)
    jax.block_until_ready(out)

    assert out.shape == (B, S, D_MODEL)
    assert bool(jnp.all(jnp.isfinite(out)))

    ref = encoder_layer_ref(x, params)
    assert bool(jnp.allclose(out, ref, atol=1e-2, rtol=1e-2)), (
        float(jnp.max(jnp.abs(out - ref))))

    print("KERNEL_OK")
</pallas_src>

<mosaic_0001>
module attributes {stable_mosaic.version = 11 : i64} {
  func.func @encoder_layer_kernel(%arg0: i32, %arg1: memref<16x32xf32, #tpu.memory_space<vmem>>, %arg2: memref<32x96xf32, #tpu.memory_space<vmem>>, %arg3: memref<32x32xf32, #tpu.memory_space<vmem>>, %arg4: memref<32x64xf32, #tpu.memory_space<vmem>>, %arg5: memref<64x32xf32, #tpu.memory_space<vmem>>, %arg6: memref<8x128xf32, #tpu.memory_space<vmem>>, %arg7: memref<16x32xf32, #tpu.memory_space<vmem>>) attributes {dimension_semantics = [#tpu.dimension_semantics<parallel>], iteration_bounds = array<i64: 1>, scalar_prefetch = 0 : i64, scratch_operands = 0 : i64, tpu.core_type = #tpu.core_type<tc>, window_params = [{transform_indices = @transform_0, window_bounds = array<i64: 16, 32>}, {pipeline_mode = #tpu.pipeline_mode<synchronous>, transform_indices = @transform_1, window_bounds = array<i64: 32, 96>}, {pipeline_mode = #tpu.pipeline_mode<synchronous>, transform_indices = @transform_2, window_bounds = array<i64: 32, 32>}, {pipeline_mode = #tpu.pipeline_mode<synchronous>, transform_indices = @transform_3, window_bounds = array<i64: 32, 64>}, {pipeline_mode = #tpu.pipeline_mode<synchronous>, transform_indices = @transform_4, window_bounds = array<i64: 64, 32>}, {pipeline_mode = #tpu.pipeline_mode<synchronous>, transform_indices = @transform_5, window_bounds = array<i64: 8, 128>}, {transform_indices = @transform_6, window_bounds = array<i64: 16, 32>}]} {
    %c0 = arith.constant 0 : index
    %c0_0 = arith.constant 0 : index
    %0 = vector.load %arg1[%c0, %c0_0] : memref<16x32xf32, #tpu.memory_space<vmem>>, vector<16x32xf32>
    %c0_1 = arith.constant 0 : index
    %c0_2 = arith.constant 0 : index
    %1 = vector.load %arg6[%c0_1, %c0_2] : memref<8x128xf32, #tpu.memory_space<vmem>>, vector<8x128xf32>
    %2 = vector.extract_strided_slice %1 {offsets = [0, 0], sizes = [1, 96], strides = [1, 1]} : vector<8x128xf32> to vector<1x96xf32>
    %3 = vector.extract_strided_slice %1 {offsets = [1, 0], sizes = [1, 32], strides = [1, 1]} : vector<8x128xf32> to vector<1x32xf32>
    %4 = vector.extract_strided_slice %1 {offsets = [2, 0], sizes = [1, 32], strides = [1, 1]} : vector<8x128xf32> to vector<1x32xf32>
    %5 = vector.extract_strided_slice %1 {offsets = [3, 0], sizes = [1, 32], strides = [1, 1]} : vector<8x128xf32> to vector<1x32xf32>
    %6 = vector.extract_strided_slice %1 {offsets = [4, 0], sizes = [1, 64], strides = [1, 1]} : vector<8x128xf32> to vector<1x64xf32>
    %7 = vector.extract_strided_slice %1 {offsets = [5, 0], sizes = [1, 32], strides = [1, 1]} : vector<8x128xf32> to vector<1x32xf32>
    %8 = vector.extract_strided_slice %1 {offsets = [6, 0], sizes = [1, 32], strides = [1, 1]} : vector<8x128xf32> to vector<1x32xf32>
    %9 = vector.extract_strided_slice %1 {offsets = [7, 0], sizes = [1, 32], strides = [1, 1]} : vector<8x128xf32> to vector<1x32xf32>
    %c0_3 = arith.constant 0 : index
    %c0_4 = arith.constant 0 : index
    %10 = vector.load %arg2[%c0_3, %c0_4] : memref<32x96xf32, #tpu.memory_space<vmem>>, vector<32x96xf32>
    %cst = arith.constant dense<0.000000e+00> : vector<16x96xf32>
    %11 = tpu.matmul %0, %10, %cst {dimension_numbers = #tpu.dot_dimension_numbers<[1], [0], [0], [1], [0, 0, 1, 1], [], []>} : vector<16x32xf32>, vector<32x96xf32>, vector<16x96xf32> -> vector<16x96xf32>
    %12 = vector.broadcast %2 : vector<1x96xf32> to vector<16x96xf32>
    %13 = arith.addf %11, %12 : vector<16x96xf32>
    %14 = vector.extract_strided_slice %13 {offsets = [0, 0], sizes = [16, 32], strides = [1, 1]} : vector<16x96xf32> to vector<16x32xf32>
    %15 = vector.extract_strided_slice %14 {offsets = [0, 0], sizes = [16, 8], strides = [1, 1]} : vector<16x32xf32> to vector<16x8xf32>
    %16 = vector.extract_strided_slice %14 {offsets = [0, 8], sizes = [16, 8], strides = [1, 1]} : vector<16x32xf32> to vector<16x8xf32>
    %17 = vector.extract_strided_slice %14 {offsets = [0, 16], sizes = [16, 8], strides = [1, 1]} : vector<16x32xf32> to vector<16x8xf32>
    %18 = vector.extract_strided_slice %14 {offsets = [0, 24], sizes = [16, 8], strides = [1, 1]} : vector<16x32xf32> to vector<16x8xf32>
    %19 = vector.shape_cast %15 : vector<16x8xf32> to vector<1x16x8xf32>
    %20 = vector.shape_cast %16 : vector<16x8xf32> to vector<1x16x8xf32>
    %21 = vector.shape_cast %17 : vector<16x8xf32> to vector<1x16x8xf32>
    %22 = vector.shape_cast %18 : vector<16x8xf32> to vector<1x16x8xf32>
    %23 = tpu.concatenate %19, %20, %21, %22 in 0 : vector<1x16x8xf32>, vector<1x16x8xf32>, vector<1x16x8xf32>, vector<1x16x8xf32> -> vector<4x16x8xf32>
    %24 = vector.shape_cast %23 : vector<4x16x8xf32> to vector<8x8x8xf32>
    %25 = vector.extract_strided_slice %13 {offsets = [0, 32], sizes = [16, 32], strides = [1, 1]} : vector<16x96xf32> to vector<16x32xf32>
    %26 = vector.extract_strided_slice %25 {offsets = [0, 0], sizes = [16, 8], strides = [1, 1]} : vector<16x32xf32> to vector<16x8xf32>
    %27 = vector.extract_strided_slice %25 {offsets = [0, 8], sizes = [16, 8], strides = [1, 1]} : vector<16x32xf32> to vector<16x8xf32>
    %28 = vector.extract_strided_slice %25 {offsets = [0, 16], sizes = [16, 8], strides = [1, 1]} : vector<16x32xf32> to vector<16x8xf32>
    %29 = vector.extract_strided_slice %25 {offsets = [0, 24], sizes = [16, 8], strides = [1, 1]} : vector<16x32xf32> to vector<16x8xf32>
    %30 = vector.shape_cast %26 : vector<16x8xf32> to vector<1x16x8xf32>
    %31 = vector.shape_cast %27 : vector<16x8xf32> to vector<1x16x8xf32>
    %32 = vector.shape_cast %28 : vector<16x8xf32> to vector<1x16x8xf32>
    %33 = vector.shape_cast %29 : vector<16x8xf32> to vector<1x16x8xf32>
    %34 = tpu.concatenate %30, %31, %32, %33 in 0 : vector<1x16x8xf32>, vector<1x16x8xf32>, vector<1x16x8xf32>, vector<1x16x8xf32> -> vector<4x16x8xf32>
    %35 = vector.shape_cast %34 : vector<4x16x8xf32> to vector<8x8x8xf32>
    %36 = vector.extract_strided_slice %13 {offsets = [0, 64], sizes = [16, 32], strides = [1, 1]} : vector<16x96xf32> to vector<16x32xf32>
    %37 = vector.extract_strided_slice %36 {offsets = [0, 0], sizes = [16, 8], strides = [1, 1]} : vector<16x32xf32> to vector<16x8xf32>
    %38 = vector.extract_strided_slice %36 {offsets = [0, 8], sizes = [16, 8], strides = [1, 1]} : vector<16x32xf32> to vector<16x8xf32>
    %39 = vector.extract_strided_slice %36 {offsets = [0, 16], sizes = [16, 8], strides = [1, 1]} : vector<16x32xf32> to vector<16x8xf32>
    %40 = vector.extract_strided_slice %36 {offsets = [0, 24], sizes = [16, 8], strides = [1, 1]} : vector<16x32xf32> to vector<16x8xf32>
    %41 = vector.shape_cast %37 : vector<16x8xf32> to vector<1x16x8xf32>
    %42 = vector.shape_cast %38 : vector<16x8xf32> to vector<1x16x8xf32>
    %43 = vector.shape_cast %39 : vector<16x8xf32> to vector<1x16x8xf32>
    %44 = vector.shape_cast %40 : vector<16x8xf32> to vector<1x16x8xf32>
    %45 = tpu.concatenate %41, %42, %43, %44 in 0 : vector<1x16x8xf32>, vector<1x16x8xf32>, vector<1x16x8xf32>, vector<1x16x8xf32> -> vector<4x16x8xf32>
    %46 = vector.shape_cast %45 : vector<4x16x8xf32> to vector<8x8x8xf32>
    "tpu.trace_start"() <{level = 10 : i32, message = "bqd,bkd->bqk"}> : () -> ()
    %cst_5 = arith.constant dense<0.000000e+00> : vector<8x8x8xf32>
    %47 = tpu.matmul %24, %35, %cst_5 {dimension_numbers = #tpu.dot_dimension_numbers<[2], [2], [1], [1], [0, 0, 0, 1, 1, 1], [0], [0]>} : vector<8x8x8xf32>, vector<8x8x8xf32>, vector<8x8x8xf32> -> vector<8x8x8xf32>
    "tpu.trace_stop"() : () -> ()
    %cst_6 = arith.constant 0.353553385 : f32
    %48 = vector.broadcast %cst_6 : f32 to vector<8x8x8xf32>
    %49 = arith.mulf %47, %48 : vector<8x8x8xf32>
    %cst_7 = arith.constant dense<0xFF800000> : vector<8x8xf32>
    %50 = vector.multi_reduction <maximumf>, %49, %cst_7 [2] : vector<8x8x8xf32> to vector<8x8xf32>
    %51 = vector.shape_cast %50 : vector<8x8xf32> to vector<8x8x1xf32>
    %52 = vector.broadcast %51 : vector<8x8x1xf32> to vector<8x8x8xf32>
    %53 = arith.subf %49, %52 : vector<8x8x8xf32>
    %54 = math.exp %53 : vector<8x8x8xf32>
    %cst_8 = arith.constant dense<0.000000e+00> : vector<8x8xf32>
    %55 = vector.multi_reduction <add>, %54, %cst_8 [2] : vector<8x8x8xf32> to vector<8x8xf32>
    %56 = vector.shape_cast %55 : vector<8x8xf32> to vector<8x8x1xf32>
    %57 = vector.broadcast %56 : vector<8x8x1xf32> to vector<8x8x8xf32>
    %58 = arith.divf %54, %57 : vector<8x8x8xf32>
    "tpu.trace_start"() <{level = 10 : i32, message = "bqk,bkd->bqd"}> : () -> ()
    %cst_9 = arith.constant dense<0.000000e+00> : vector<8x8x8xf32>
    %59 = tpu.matmul %58, %46, %cst_9 {dimension_numbers = #tpu.dot_dimension_numbers<[2], [1], [1], [2], [0, 0, 0, 1, 1, 2], [0], [0]>} : vector<8x8x8xf32>, vector<8x8x8xf32>, vector<8x8x8xf32> -> vector<8x8x8xf32>
    "tpu.trace_stop"() : () -> ()
    %60 = vector.shape_cast %59 : vector<8x8x8xf32> to vector<4x16x8xf32>
    %61 = vector.extract_strided_slice %60 {offsets = [0, 0, 0], sizes = [1, 16, 8], strides = [1, 1, 1]} : vector<4x16x8xf32> to vector<1x16x8xf32>
    %62 = vector.shape_cast %61 : vector<1x16x8xf32> to vector<16x8xf32>
    %63 = vector.extract_strided_slice %60 {offsets = [1, 0, 0], sizes = [1, 16, 8], strides = [1, 1, 1]} : vector<4x16x8xf32> to vector<1x16x8xf32>
    %64 = vector.shape_cast %63 : vector<1x16x8xf32> to vector<16x8xf32>
    %65 = vector.extract_strided_slice %60 {offsets = [2, 0, 0], sizes = [1, 16, 8], strides = [1, 1, 1]} : vector<4x16x8xf32> to vector<1x16x8xf32>
    %66 = vector.shape_cast %65 : vector<1x16x8xf32> to vector<16x8xf32>
    %67 = vector.extract_strided_slice %60 {offsets = [3, 0, 0], sizes = [1, 16, 8], strides = [1, 1, 1]} : vector<4x16x8xf32> to vector<1x16x8xf32>
    %68 = vector.shape_cast %67 : vector<1x16x8xf32> to vector<16x8xf32>
    %69 = tpu.concatenate %62, %64, %66, %68 in 1 : vector<16x8xf32>, vector<16x8xf32>, vector<16x8xf32>, vector<16x8xf32> -> vector<16x32xf32>
    %c0_10 = arith.constant 0 : index
    %c0_11 = arith.constant 0 : index
    %70 = vector.load %arg3[%c0_10, %c0_11] : memref<32x32xf32, #tpu.memory_space<vmem>>, vector<32x32xf32>
    %cst_12 = arith.constant dense<0.000000e+00> : vector<16x32xf32>
    %71 = tpu.matmul %69, %70, %cst_12 {dimension_numbers = #tpu.dot_dimension_numbers<[1], [0], [0], [1], [0, 0, 1, 1], [], []>} : vector<16x32xf32>, vector<32x32xf32>, vector<16x32xf32> -> vector<16x32xf32>
    %72 = vector.broadcast %3 : vector<1x32xf32> to vector<16x32xf32>
    %73 = arith.addf %71, %72 : vector<16x32xf32>
    %74 = arith.addf %0, %73 : vector<16x32xf32>
    %cst_13 = arith.constant dense<0.000000e+00> : vector<16xf32>
    %75 = vector.multi_reduction <add>, %74, %cst_13 [1] : vector<16x32xf32> to vector<16xf32>
    %76 = vector.shape_cast %75 : vector<16xf32> to vector<16x1xf32>
    %cst_14 = arith.constant 3.200000e+01 : f32
    %77 = vector.broadcast %cst_14 : f32 to vector<16x1xf32>
    %78 = arith.divf %76, %77 : vector<16x1xf32>
    %79 = vector.broadcast %78 : vector<16x1xf32> to vector<16x32xf32>
    %80 = arith.subf %74, %79 : vector<16x32xf32>
    %81 = arith.mulf %80, %80 : vector<16x32xf32>
    %cst_15 = arith.constant dense<0.000000e+00> : vector<16xf32>
    %82 = vector.multi_reduction <add>, %81, %cst_15 [1] : vector<16x32xf32> to vector<16xf32>
    %83 = vector.shape_cast %82 : vector<16xf32> to vector<16x1xf32>
    %cst_16 = arith.constant 3.200000e+01 : f32
    %84 = vector.broadcast %cst_16 : f32 to vector<16x1xf32>
    %85 = arith.divf %83, %84 : vector<16x1xf32>
    %cst_17 = arith.constant 9.99999974E-6 : f32
    %86 = vector.broadcast %cst_17 : f32 to vector<16x1xf32>
    %87 = arith.addf %85, %86 : vector<16x1xf32>
    %88 = math.rsqrt %87 : vector<16x1xf32>
    %89 = vector.broadcast %88 : vector<16x1xf32> to vector<16x32xf32>
    %90 = arith.mulf %80, %89 : vector<16x32xf32>
    %91 = vector.broadcast %4 : vector<1x32xf32> to vector<16x32xf32>
    %92 = arith.mulf %90, %91 : vector<16x32xf32>
    %93 = vector.broadcast %5 : vector<1x32xf32> to vector<16x32xf32>
    %94 = arith.addf %92, %93 : vector<16x32xf32>
    %c0_18 = arith.constant 0 : index
    %c0_19 = arith.constant 0 : index
    %95 = vector.load %arg4[%c0_18, %c0_19] : memref<32x64xf32, #tpu.memory_space<vmem>>, vector<32x64xf32>
    %cst_20 = arith.constant dense<0.000000e+00> : vector<16x64xf32>
    %96 = tpu.matmul %94, %95, %cst_20 {dimension_numbers = #tpu.dot_dimension_numbers<[1], [0], [0], [1], [0, 0, 1, 1], [], []>} : vector<16x32xf32>, vector<32x64xf32>, vector<16x64xf32> -> vector<16x64xf32>
    %97 = vector.broadcast %6 : vector<1x64xf32> to vector<16x64xf32>
    %98 = arith.addf %96, %97 : vector<16x64xf32>
    %cst_21 = arith.constant 0.000000e+00 : f32
    %99 = vector.broadcast %cst_21 : f32 to vector<16x64xf32>
    %100 = arith.maximumf %98, %99 : vector<16x64xf32>
    %c0_22 = arith.constant 0 : index
    %c0_23 = arith.constant 0 : index
    %101 = vector.load %arg5[%c0_22, %c0_23] : memref<64x32xf32, #tpu.memory_space<vmem>>, vector<64x32xf32>
    %cst_24 = arith.constant dense<0.000000e+00> : vector<16x32xf32>
    %102 = tpu.matmul %100, %101, %cst_24 {dimension_numbers = #tpu.dot_dimension_numbers<[1], [0], [0], [1], [0, 0, 1, 1], [], []>} : vector<16x64xf32>, vector<64x32xf32>, vector<16x32xf32> -> vector<16x32xf32>
    %103 = vector.broadcast %7 : vector<1x32xf32> to vector<16x32xf32>
    %104 = arith.addf %102, %103 : vector<16x32xf32>
    %105 = arith.addf %94, %104 : vector<16x32xf32>
    %cst_25 = arith.constant dense<0.000000e+00> : vector<16xf32>
    %106 = vector.multi_reduction <add>, %105, %cst_25 [1] : vector<16x32xf32> to vector<16xf32>
    %107 = vector.shape_cast %106 : vector<16xf32> to vector<16x1xf32>
    %cst_26 = arith.constant 3.200000e+01 : f32
    %108 = vector.broadcast %cst_26 : f32 to vector<16x1xf32>
    %109 = arith.divf %107, %108 : vector<16x1xf32>
    %110 = vector.broadcast %109 : vector<16x1xf32> to vector<16x32xf32>
    %111 = arith.subf %105, %110 : vector<16x32xf32>
    %112 = arith.mulf %111, %111 : vector<16x32xf32>
    %cst_27 = arith.constant dense<0.000000e+00> : vector<16xf32>
    %113 = vector.multi_reduction <add>, %112, %cst_27 [1] : vector<16x32xf32> to vector<16xf32>
    %114 = vector.shape_cast %113 : vector<16xf32> to vector<16x1xf32>
    %cst_28 = arith.constant 3.200000e+01 : f32
    %115 = vector.broadcast %cst_28 : f32 to vector<16x1xf32>
    %116 = arith.divf %114, %115 : vector<16x1xf32>
    %cst_29 = arith.constant 9.99999974E-6 : f32
    %117 = vector.broadcast %cst_29 : f32 to vector<16x1xf32>
    %118 = arith.addf %116, %117 : vector<16x1xf32>
    %119 = math.rsqrt %118 : vector<16x1xf32>
    %120 = vector.broadcast %119 : vector<16x1xf32> to vector<16x32xf32>
    %121 = arith.mulf %111, %120 : vector<16x32xf32>
    %122 = vector.broadcast %8 : vector<1x32xf32> to vector<16x32xf32>
    %123 = arith.mulf %121, %122 : vector<16x32xf32>
    %124 = vector.broadcast %9 : vector<1x32xf32> to vector<16x32xf32>
    %125 = arith.addf %123, %124 : vector<16x32xf32>
    %c0_30 = arith.constant 0 : index
    %c0_31 = arith.constant 0 : index
    %126 = vector.load %arg7[%c0_30, %c0_31] : memref<16x32xf32, #tpu.memory_space<vmem>>, vector<16x32xf32>
    tpu.vector_store %arg7[%c0_30, %c0_31], %125 {strides = array<i32>} : memref<16x32xf32, #tpu.memory_space<vmem>>, vector<16x32xf32>,
    return
  }
  func.func @transform_0(%arg0: i32) -> (i32, i32) {
    %c0_i32 = arith.constant 0 : i32
    %c0_i32_0 = arith.constant 0 : i32
    return %arg0, %c0_i32 : i32, i32
  }
  func.func @transform_1(%arg0: i32) -> (i32, i32) {
    %c0_i32 = arith.constant 0 : i32
    %c0_i32_0 = arith.constant 0 : i32
    %c0_i32_1 = arith.constant 0 : i32
    return %c0_i32, %c0_i32_0 : i32, i32
  }
  func.func @transform_2(%arg0: i32) -> (i32, i32) {
    %c0_i32 = arith.constant 0 : i32
    %c0_i32_0 = arith.constant 0 : i32
    %c0_i32_1 = arith.constant 0 : i32
    return %c0_i32, %c0_i32_0 : i32, i32
  }
  func.func @transform_3(%arg0: i32) -> (i32, i32) {
    %c0_i32 = arith.constant 0 : i32
    %c0_i32_0 = arith.constant 0 : i32
    %c0_i32_1 = arith.constant 0 : i32
    return %c0_i32, %c0_i32_0 : i32, i32
  }
  func.func @transform_4(%arg0: i32) -> (i32, i32) {
    %c0_i32 = arith.constant 0 : i32
    %c0_i32_0 = arith.constant 0 : i32
    %c0_i32_1 = arith.constant 0 : i32
    return %c0_i32, %c0_i32_0 : i32, i32
  }
  func.func @transform_5(%arg0: i32) -> (i32, i32) {
    %c0_i32 = arith.constant 0 : i32
    %c0_i32_0 = arith.constant 0 : i32
    %c0_i32_1 = arith.constant 0 : i32
    return %c0_i32, %c0_i32_0 : i32, i32
  }
  func.func @transform_6(%arg0: i32) -> (i32, i32) {
    %c0_i32 = arith.constant 0 : i32
    %c0_i32_0 = arith.constant 0 : i32
    return %arg0, %c0_i32 : i32, i32
  }
}

</mosaic_0001>

<bundles_post_ra>
// kernel: tpu_custom_call.1
= control target key start
LH: loop header
LB: loop body
LE: loop exit
PB: predicated region body
PF: predicated region fallthrough
CT: control target
= control target key end

     0   :  { %11 = vsyncpa [#allocation3], 0  ;;  %s2514_s0 = inlined_call_operand.hbm [shape: f32[16,32], index: 0, kind: input, shape index: {}]   ;;  %s2515_s1 = inlined_call_operand.vmem [shape: f32[32,96], index: 1, kind: input, shape index: {}]   ;;  %s2516_s2 = inlined_call_operand.vmem [shape: f32[32,32], index: 2, kind: input, shape index: {}]   ;;  %s2517_s3 = inlined_call_operand.vmem [shape: f32[32,64], index: 3, kind: input, shape index: {}]   ;;  %s2518_s4 = inlined_call_operand.vmem [shape: f32[64,32], index: 4, kind: input, shape index: {}]   ;;  %s2519_s5 = inlined_call_operand.vmem [shape: f32[8,128], index: 5, kind: input, shape index: {}]   ;;  %s2520_s6 = inlined_call_operand.hbm [shape: f32[16,32], index: 6, kind: output, shape index: {}]  }
   0x1   :  { %12 = vsyncpa [#allocation4], 0  ;;  %s2185_s21 = smov [#allocation2]  }
   0x2   :  { %s18_s22 = sshll.u32 %s2185_s21, 4  ;;  %s19_s22 = int_to_ptr.vmem [resolvable:$true] %s18_s22 }
   0x3   :  { %s2149_s23 = scalar_lea.vmem %s19_s22, 256  ;;  %p2154_p1 = scmp.lt.s32.totalorder %s19_s22, %s19_s22 }
   0x4   :  { %p2150_p0 = scmp.ne.s32.totalorder %s19_s22, %s2149_s23  ;;  %p2155_p2 = scmp.lt.s32.totalorder %s2149_s23, %s2149_s23 }
   0x6   :  { %p2156_p3 = por %p2155_p2, %p2154_p1 }
   0x8   :  { %p2157_p4 = pnand %p2156_p3, %p2150_p0 }
   0xa   :  { %2160 = shalt.err (!%p2157_p4)
}
   0xb   :  { %s2186_s24 = smov 128   ;;  %s2187_s25 = smov 8  }
   0xc   :  { %24 = dma.hbm_to_vmem [thread:$0]  %s2514_s0, 256, %s19_s22, [#allocation3], %s2186_s24, %s2186_s24, %s2187_s25  }
   0xd   :  { %2181 = dma.done.wait [#allocation3], 256  }
   0xe   :  { %2182 = vsyncadd [#allocation3], 4294967040  ;;  %vm49_vm0 = vcmask 261120   ;;  %v44_v0 = vld [vmem:[%s2515_s1 + $0x18] sm:$0xff]  ;;  %v43_v1 = vld [vmem:[%s2515_s1 + $0x10] sm:$0xff]  ;;  %v45_v6 = vlaneseq  ;;  %v2188_v12 = vmov 0.0  }
   0xf   :  { %1956 = vmatprep.subr.mxu1 %v44_v0  ;;  %v2245_v2 = vld [vmem:[#allocation2] sm:$0xff]  ;;  %v42_v3 = vld [vmem:[%s2515_s1 + $0x8] sm:$0xff]  ;;  %1977 = vmatprep.subr.mxu0 %v2188_v12  ;;  %s2190_s13 = smov 120   ;;  %vm2191_vm1 = vmmov 0   ;;  %s2193_s14 = smov 96   ;;  %vm147_vm2 = vcmask 64512  }
  0x10   :  { %1957 = vmatpush3.msra.mxu1 %v44_v0  ;;  %1964 = vmatprep.mubr.msk.f32.mxu1 %vm49_vm0, %v2245_v2  ;;  %v41_v4 = vld [vmem:[%s2515_s1] sm:$0xff]  ;;  %v2255_v5 = vld [vmem:[#allocation2 + $0x8] sm:$0xff]  ;;  %v2259_v7 = vshrl.u32 %v45_v6, 7  ;;  %s2189_s1 = smov 112   ;;  %s2194_s15 = smov 64   ;;  %vm1484_vm3 = vcmask 130048  }
  0x11   :  { %1958 = vmatprep.subr.mxu1 %v43_v1  ;;  %v2265_v9 = vld [vmem:[%s2519_s5] sm:$0xff]  ;;  %1979 = vmatprep.mubr.msk.f32.mxu0 %vm2191_vm1, %v2188_v12  ;;  %s2192_s5 = smov 104   ;;  %s2195_s26 = smov 16   ;;  %vm1487_vm4 = vcmask 195584   ;;  %vm1723_vm5 = vcmask 523264  }
  0x12   :  { %1959 = vmatpush3.msra.mxu1 %v43_v1  ;;  %v47_v8 = vsub.s32 0, %v2259_v7  ;;  %s2196_s27 = smov 24  }
  0x13   :  { %1960 = vmatprep.subr.mxu1 %v42_v3 }
  0x14   :  { %1961 = vmatpush3.msra.mxu1 %v42_v3  ;;  %v48_v11 = vrot.slane %v2265_v9, %v47_v8 }
  0x15   :  { %1962 = vmatprep.subr.mxu1 %v41_v4 }
  0x16   :  { %1963 = vmatpush3.msra.mxu1 %v41_v4 }
  0x17   :  { %1965 = vmatmul.mubr.msk.f32.vlgmr.msra.gmra.mxu1 %vm49_vm0, %v2255_v5  ;;  %1967 = vmatprep.subr.mxu1 %v2188_v12 }
  0x18   :  { %1969 = vmatprep.mubr.msk.f32.mxu1 %vm2191_vm1, %v2188_v12 }
  0xd7   :  { %v1966_v10 = vpop.f32.mrf.mxu1 }
  0xd8   :  { %v2278_v15 = vadd.f32 %v1966_v10, %v48_v11 }
  0xd9   :  { %v122_v13 = vpop.f32.mrf.mxu1 }
  0xda   :  { %v2270_v14 = vadd.f32 %v122_v13, %v48_v11 }
  0xdc   :  { %137 = vrot.lane.b32.xlu1 %v2270_v14, %s2189_s1  ;;  %133 = vrot.lane.b32.xlu0 %v2270_v14, %s2190_s13 }
  0xe0   :  { %139 = vrot.lane.b32.xlu1 %v2278_v15, %s2189_s1  ;;  %135 = vrot.lane.b32.xlu0 %v2278_v15, %s2190_s13 }
  0xe4   :  { %143 = vrot.lane.b32.xlu1 %v2278_v15, %s2192_s5  ;;  %141 = vrot.lane.b32.xlu0 %v2270_v14, %s2192_s5 }
  0xe8   :  { %222 = vrot.lane.b32.xlu1 %v2278_v15, %s2193_s14  ;;  %145 = vrot.lane.b32.xlu0 %v2270_v14, %s2193_s14 }
 0x14e   :  { %v2286_v16 = vpop.permute.xlu1 %137  ;;  %v2288_v17 = vpop.permute.xlu0 %133 }
 0x14f   :  { %298 = vrot.lane.b32.xlu0 %v2288_v17, %s2193_s14 }
 0x152   :  { %v2291_v18 = vpop.permute.xlu1 %139  ;;  %v2293_v19 = vpop.permute.xlu0 %135 }
 0x153   :  { %450 = vrot.lane.b32.xlu0 %v2286_v16, %s2193_s14  ;;  %374 = vrot.lane.b32.xlu1 %v2293_v19, %s2193_s14 }
 0x156   :  { %v2297_v20 = vpop.permute.xlu0 %141  ;;  %v2301_v21 = vpop.permute.xlu1 %143 }
 0x157   :  { %526 = vrot.lane.b32.xlu1 %v2291_v18, %s2193_s14  ;;  %602 = vrot.lane.b32.xlu0 %v2297_v20, %s2193_s14 }
 0x15a   :  { %v146_v22 = vpop.permute.xlu0 %145  ;;  %v223_v23 = vpop.permute.xlu1 %222 }
 0x15b   :  { %678 = vrot.lane.b32.xlu1 %v2301_v21, %s2193_s14  ;;  %1968 = vmatpush3.xpose.msk.msra.mxu1 %vm147_vm2, %v146_v22 }
 0x15c   :  { %1972 = vmatprep.subr.mxu1 %v2188_v12 }
 0x15e   :  { %1970 = vmatmul.mubr.msk.f32.vlgmr.msra.gmra.mxu1 %vm147_vm2, %v2270_v14 }
 0x15f   :  { %1973 = vmatpush3.xpose.msk.msra.mxu1 %vm147_vm2, %v223_v23  ;;  %1974 = vmatprep.mubr.msk.f32.mxu1 %vm2191_vm1, %v2188_v12 }
 0x160   :  { %1982 = vmatprep.subr.mxu1 %v2188_v12 }
 0x162   :  { %1975 = vmatmul.mubr.msk.f32.vlgmr.msra.gmra.mxu1 %vm147_vm2, %v2278_v15 }
 0x163   :  { %1984 = vmatprep.mubr.msk.f32.mxu1 %vm2191_vm1, %v2188_v12 }
 0x1c1   :  { %v299_v24 = vpop.permute.xlu0 %298 }
 0x1c2   :  { %1978 = vmatpush3.xpose.msk.msra.mxu0 %vm147_vm2, %v299_v24 }
 0x1c3   :  { %1987 = vmatprep.subr.mxu0 %v2188_v12 }
 0x1c5   :  { %v375_v25 = vpop.permute.xlu1 %374  ;;  %1980 = vmatmul.mubr.msk.f32.vlgmr.msra.gmra.mxu0 %vm147_vm2, %v2288_v17  ;;  %v451_v26 = vpop.permute.xlu0 %450 }
 0x1c6   :  { %1983 = vmatpush3.xpose.msk.msra.mxu1 %vm147_vm2, %v375_v25  ;;  %1988 = vmatpush3.xpose.msk.msra.mxu0 %vm147_vm2, %v451_v26 }
 0x1c7   :  { %1989 = vmatprep.mubr.msk.f32.mxu0 %vm2191_vm1, %v2188_v12  ;;  %1992 = vmatprep.subr.mxu1 %v2188_v12 }
 0x1c8   :  { %1997 = vmatprep.subr.mxu0 %v2188_v12 }
 0x1c9   :  { %v527_v27 = vpop.permute.xlu1 %526  ;;  %1985 = vmatmul.mubr.msk.f32.vlgmr.msra.gmra.mxu1 %vm147_vm2, %v2293_v19  ;;  %1990 = vmatmul.mubr.msk.f32.vlgmr.msra.gmra.mxu0 %vm147_vm2, %v2286_v16  ;;  %v603_v28 = vpop.permute.xlu0 %602 }
 0x1ca   :  { %1993 = vmatpush3.xpose.msk.msra.mxu1 %vm147_vm2, %v527_v27  ;;  %1998 = vmatpush3.xpose.msk.msra.mxu0 %vm147_vm2, %v603_v28 }
 0x1cb   :  { %1994 = vmatprep.mubr.msk.f32.mxu1 %vm2191_vm1, %v2188_v12  ;;  %1999 = vmatprep.mubr.msk.f32.mxu0 %vm2191_vm1, %v2188_v12 }
 0x1cc   :  { %2002 = vmatprep.subr.mxu1 %v2188_v12  ;;  %2007 = vmatprep.subr.mxu0 %v2188_v12 }
 0x1cd   :  { %v679_v29 = vpop.permute.xlu1 %678  ;;  %1995 = vmatmul.mubr.msk.f32.vlgmr.msra.gmra.mxu1 %vm147_vm2, %v2291_v18  ;;  %2000 = vmatmul.mubr.msk.f32.vlgmr.msra.gmra.mxu0 %vm147_vm2, %v2297_v20 }
 0x1ce   :  { %2003 = vmatpush3.xpose.msk.msra.mxu1 %vm147_vm2, %v679_v29  ;;  %2004 = vmatprep.mubr.msk.f32.mxu1 %vm2191_vm1, %v2188_v12 }
 0x1cf   :  { %2012 = vmatprep.subr.mxu1 %v2188_v12  ;;  %2009 = vmatprep.mubr.msk.f32.mxu0 %vm2191_vm1, %v2188_v12 }
 0x1d1   :  { %2005 = vmatmul.mubr.msk.f32.vlgmr.msra.gmra.mxu1 %vm147_vm2, %v2301_v21 }
 0x1d2   :  { %2014 = vmatprep.mubr.msk.f32.mxu1 %vm2191_vm1, %v2188_v12 }
 0x21e   :  { %v218_v30 = vpop.f32.mrf.mxu1 }
 0x21f   :  { %v754_v31 = vmul.f32 0.35355338, %v218_v30 }
 0x220   :  { %v1971_v32 = vpop.f32.mrf.mxu1 }
 0x221   :  { %v762_v33 = vsel %vm147_vm2, %v754_v31, -inf }
 0x222   :  { %763 = vmax.xlane.f32.xlu0 %v762_v33  ;;  %v294_v34 = vpop.f32.mrf.mxu1 }
 0x223   :  { %v755_v35 = vmul.f32 0.35355338, %v294_v34 }
 0x224   :  { %v1976_v36 = vpop.f32.mrf.mxu1 }
 0x225   :  { %v765_v37 = vsel %vm147_vm2, %v755_v35, -inf }
 0x226   :  { %766 = vmax.xlane.f32.xlu1 %v765_v37 }
 0x285   :  { %v370_v38 = vpop.f32.mrf.mxu0 }
 0x286   :  { %v756_v39 = vmul.f32 0.35355338, %v370_v38 }
 0x287   :  { %v1981_v40 = vpop.f32.mrf.mxu0 }
 0x288   :  { %v768_v41 = vsel %vm147_vm2, %v756_v39, -inf }
 0x289   :  { %v446_v42 = vpop.f32.mrf.mxu1  ;;  %769 = vmax.xlane.f32.xlu0 %v768_v41  ;;  %v522_v43 = vpop.f32.mrf.mxu0 }
 0x28a   :  { %v757_v44 = vmul.f32 0.35355338, %v446_v42  ;;  %v758_v45 = vmul.f32 0.35355338, %v522_v43 }
 0x28b   :  { %v1986_v46 = vpop.f32.mrf.mxu1  ;;  %v1991_v47 = vpop.f32.mrf.mxu0 }
 0x28c   :  { %v771_v48 = vsel %vm147_vm2, %v757_v44, -inf  ;;  %v774_v49 = vsel %vm147_vm2, %v758_v45, -inf }
 0x28d   :  { %v598_v50 = vpop.f32.mrf.mxu1  ;;  %772 = vmax.xlane.f32.xlu0 %v771_v48  ;;  %775 = vmax.xlane.f32.xlu1 %v774_v49  ;;  %v674_v51 = vpop.f32.mrf.mxu0 }
 0x28e   :  { %v759_v52 = vmul.f32 0.35355338, %v598_v50  ;;  %v760_v53 = vmul.f32 0.35355338, %v674_v51 }
 0x28f   :  { %v1996_v54 = vpop.f32.mrf.mxu1  ;;  %v2001_v55 = vpop.f32.mrf.mxu0 }
 0x290   :  { %v777_v56 = vsel %vm147_vm2, %v759_v52, -inf  ;;  %v780_v57 = vsel %vm147_vm2, %v760_v53, -inf }
 0x291   :  { %v750_v58 = vpop.f32.mrf.mxu1  ;;  %778 = vmax.xlane.f32.xlu0 %v777_v56  ;;  %781 = vmax.xlane.f32.xlu1 %v780_v57 }
 0x292   :  { %v761_v59 = vmul.f32 0.35355338, %v750_v58 }
 0x293   :  { %v2006_v60 = vpop.f32.mrf.mxu1 }
 0x294   :  { %v783_v61 = vsel %vm147_vm2, %v761_v59, -inf }
 0x295   :  { %784 = vmax.xlane.f32.xlu0 %v783_v61 }
 0x2a2   :  { %850 = vrot.lane.b32.xlu1 %v2270_v14, %s2194_s15 }
 0x2a6   :  { %1002 = vrot.lane.b32.xlu1 %v2288_v17, %s2194_s15 }
 0x2aa   :  { %1078 = vrot.lane.b32.xlu1 %v2293_v19, %s2194_s15 }
 0x2ab   :  { %926 = vrot.lane.b32.xlu0 %v2278_v15, %s2194_s15  ;;  %v764_v0 = vpop.xlane.xlu0 %763 }
 0x2ac   :  { %v786_v1 = vsub.f32 %v754_v31, %v764_v0 }
 0x2ae   :  { %1230 = vrot.lane.b32.xlu1 %v2291_v18, %s2194_s15  ;;  %v794_v4 = vmul.f32 1.442695, %v786_v1 }
 0x2af   :  { %1154 = vrot.lane.b32.xlu0 %v2286_v16, %s2194_s15  ;;  %v767_v62 = vpop.xlane.xlu1 %766 }
 0x2b0   :  { %v787_v63 = vsub.f32 %v755_v35, %v767_v62 }
 0x2b2   :  { %v796_v3 = vmul.f32 1.442695, %v787_v63 }
 0x2b4   :  { %2101 = vpow2.f32 %v796_v3 }
 0x2b5   :  { %2103 = vpow2.f32 %v794_v4 }
 0x2c1   :  { %v2372_v6 = vpop.eup %2101 }
 0x2c2   :  { %v813_v8 = vsel %vm147_vm2, %v2372_v6, 0.0  ;;  %v2376_v10 = vpop.eup %2103 }
 0x2c3   :  { %v810_v11 = vsel %vm147_vm2, %v2376_v10, 0.0 }
 0x2ce   :  { %814 = vadd.xlane.f32.xlu0 %v813_v8 }
 0x2d2   :  { %811 = vadd.xlane.f32.xlu1 %v810_v11 }
 0x312   :  { %v770_v13 = vpop.xlane.xlu0 %769 }
 0x313   :  { %v788_v14 = vsub.f32 %v756_v39, %v770_v13 }
 0x315   :  { %v798_v15 = vmul.f32 1.442695, %v788_v14 }
 0x316   :  { %v776_v16 = vpop.xlane.xlu1 %775  ;;  %v773_v17 = vpop.xlane.xlu0 %772 }
 0x317   :  { %2105 = vpow2.f32 %v798_v15  ;;  %v790_v18 = vsub.f32 %v758_v45, %v776_v16  ;;  %v789_v19 = vsub.f32 %v757_v44, %v773_v17 }
 0x319   :  { %v802_v22 = vmul.f32 1.442695, %v790_v18  ;;  %v800_v23 = vmul.f32 1.442695, %v789_v19 }
 0x31a   :  { %v782_v24 = vpop.xlane.xlu1 %781  ;;  %v779_v25 = vpop.xlane.xlu0 %778 }
 0x31b   :  { %2107 = vpow2.f32 %v802_v22  ;;  %v792_v26 = vsub.f32 %v760_v53, %v782_v24  ;;  %v791_v27 = vsub.f32 %v759_v52, %v779_v25  ;;  %v1493_v22 = vld [vmem:[%s2516_s2 + $0x18] sm:$0xff]  ;;  %v1490_v25 = vld [vmem:[%s2516_s2] sm:$0xff] }
 0x31c   :  { %2109 = vpow2.f32 %v800_v23  ;;  %v1492_v23 = vld [vmem:[%s2516_s2 + $0x10] sm:$0xff] }
 0x31d   :  { %v806_v28 = vmul.f32 1.442695, %v792_v26  ;;  %v804_v29 = vmul.f32 1.442695, %v791_v27 }
 0x31e   :  { %v851_v30 = vpop.permute.xlu1 %850  ;;  %v785_v31 = vpop.xlane.xlu0 %784 }
 0x31f   :  { %2111 = vpow2.f32 %v806_v28  ;;  %v793_v32 = vsub.f32 %v761_v59, %v785_v31  ;;  %2008 = vmatpush3.msra.mxu0 %v851_v30 }
 0x320   :  { %2113 = vpow2.f32 %v804_v29  ;;  %2017 = vmatprep.subr.mxu0 %v2188_v12 }
 0x321   :  { %v808_v33 = vmul.f32 1.442695, %v793_v32 }
 0x322   :  { %v927_v34 = vpop.permute.xlu0 %926  ;;  %v1003_v47 = vpop.permute.xlu1 %1002 }
 0x323   :  { %2115 = vpow2.f32 %v808_v33  ;;  %2013 = vmatpush3.msra.mxu1 %v927_v34 }
 0x324   :  { %v2106_v35 = vpop.eup %2105  ;;  %2022 = vmatprep.subr.mxu1 %v2188_v12 }
 0x325   :  { %v816_v36 = vsel %vm147_vm2, %v2106_v35, 0.0 }
 0x326   :  { %817 = vadd.xlane.f32.xlu1 %v816_v36  ;;  %v1079_v48 = vpop.permute.xlu1 %1078  ;;  %v1155_v49 = vpop.permute.xlu0 %1154 }
 0x328   :  { %v2108_v37 = vpop.eup %2107 }
 0x329   :  { %v2110_v38 = vpop.eup %2109  ;;  %v822_v39 = vsel %vm147_vm2, %v2108_v37, 0.0 }
 0x32a   :  { %823 = vadd.xlane.f32.xlu1 %v822_v39  ;;  %v819_v40 = vsel %vm147_vm2, %v2110_v38, 0.0  ;;  %v1231_v50 = vpop.permute.xlu1 %1230 }
 0x32b   :  { %820 = vadd.xlane.f32.xlu0 %v819_v40 }
 0x32c   :  { %v2112_v41 = vpop.eup %2111 }
 0x32d   :  { %v2385_v42 = vpop.eup %2113  ;;  %v828_v43 = vsel %vm147_vm2, %v2112_v41, 0.0 }
 0x32e   :  { %829 = vadd.xlane.f32.xlu1 %v828_v43  ;;  %v825_v44 = vsel %vm147_vm2, %v2385_v42, 0.0 }
 0x32f   :  { %826 = vadd.xlane.f32.xlu0 %v825_v44 }
 0x330   :  { %v2390_v45 = vpop.eup %2115 }
 0x331   :  { %v831_v46 = vsel %vm147_vm2, %v2390_v45, 0.0 }
 0x333   :  { %832 = vadd.xlane.f32.xlu0 %v831_v46 }
 0x33f   :  { %1382 = vrot.lane.b32.xlu1 %v2301_v21, %s2194_s15 }
 0x349   :  { %1306 = vrot.lane.b32.xlu0 %v2297_v20, %s2194_s15 }
 0x357   :  { %v815_v51 = vpop.xlane.xlu0 %814 }
 0x358   :  { %2117 = vrcp.f32 %v815_v51 }
 0x35b   :  { %v812_v52 = vpop.xlane.xlu1 %811 }
 0x35c   :  { %2119 = vrcp.f32 %v812_v52 }
 0x365   :  { %v2118_v53 = vpop.eup %2117 }
 0x366   :  { %v837_v54 = vmul.f32 %v2118_v53, %v2372_v6 }
 0x368   :  { %2015 = vmatmul.mubr.msk.f32.vlgmr.msra.gmra.mxu1 %vm147_vm2, %v837_v54 }
 0x369   :  { %v2120_v55 = vpop.eup %2119  ;;  %2023 = vmatpush3.msra.mxu1 %v1079_v48  ;;  %2024 = vmatprep.mubr.msk.f32.mxu1 %vm2191_vm1, %v2188_v12 }
 0x36a   :  { %v835_v20 = vmul.f32 %v2120_v55, %v2376_v10  ;;  %2032 = vmatprep.subr.mxu1 %v2188_v12 }
 0x36c   :  { %2010 = vmatmul.mubr.msk.f32.vlgmr.msra.gmra.mxu0 %vm147_vm2, %v835_v20 }
 0x36d   :  { %2018 = vmatpush3.msra.mxu0 %v1003_v47  ;;  %2019 = vmatprep.mubr.msk.f32.mxu0 %vm2191_vm1, %v2188_v12 }
 0x36e   :  { %2027 = vmatprep.subr.mxu0 %v2188_v12 }
 0x3af   :  { %v818_v21 = vpop.xlane.xlu1 %817 }
 0x3b0   :  { %2121 = vrcp.f32 %v818_v21 }
 0x3b3   :  { %v824_v56 = vpop.xlane.xlu1 %823 }
 0x3b4   :  { %2123 = vrcp.f32 %v824_v56  ;;  %v821_v57 = vpop.xlane.xlu0 %820 }
 0x3b5   :  { %2125 = vrcp.f32 %v821_v57 }
 0x3b7   :  { %v830_v58 = vpop.xlane.xlu1 %829 }
 0x3b8   :  { %2127 = vrcp.f32 %v830_v58  ;;  %v827_v59 = vpop.xlane.xlu0 %826 }
 0x3b9   :  { %2129 = vrcp.f32 %v827_v59 }
 0x3bb   :  { %v1383_v13 = vpop.permute.xlu1 %1382 }
 0x3bc   :  { %v833_v60 = vpop.xlane.xlu0 %832 }
 0x3bd   :  { %v2122_v61 = vpop.eup %2121  ;;  %2131 = vrcp.f32 %v833_v60 }
 0x3be   :  { %v839_v62 = vmul.f32 %v2122_v61, %v2106_v35 }
 0x3c0   :  { %2020 = vmatmul.mubr.msk.f32.vlgmr.msra.gmra.mxu0 %vm147_vm2, %v839_v62  ;;  %v1307_v4 = vpop.permute.xlu0 %1306 }
 0x3c1   :  { %v2124_v63 = vpop.eup %2123  ;;  %2028 = vmatpush3.msra.mxu0 %v1155_v49  ;;  %2029 = vmatprep.mubr.msk.f32.mxu0 %vm2191_vm1, %v2188_v12  ;;  %v1496_v49 = vsub.s32 1, %v2259_v7 }
 0x3c2   :  { %v2126_v0 = vpop.eup %2125  ;;  %2037 = vmatprep.subr.mxu0 %v2188_v12  ;;  %v843_v1 = vmul.f32 %v2124_v63, %v2108_v37 }
 0x3c3   :  { %v841_v3 = vmul.f32 %v2126_v0, %v2110_v38 }
 0x3c4   :  { %2030 = vmatmul.mubr.msk.f32.vlgmr.msra.gmra.mxu0 %vm147_vm2, %v843_v1 }
 0x3c5   :  { %v2128_v6 = vpop.eup %2127  ;;  %2025 = vmatmul.mubr.msk.f32.vlgmr.msra.gmra.mxu1 %vm147_vm2, %v841_v3  ;;  %2038 = vmatpush3.msra.mxu0 %v1307_v4  ;;  %v1622_v3 = vld [vmem:[%s2517_s3 + $0x10] sm:$0xff]  ;;  %v1621_v4 = vld [vmem:[%s2517_s3 + $0x8] sm:$0xff] }
 0x3c6   :  { %v2130_v8 = vpop.eup %2129  ;;  %2033 = vmatpush3.msra.mxu1 %v1231_v50  ;;  %2034 = vmatprep.mubr.msk.f32.mxu1 %vm2191_vm1, %v2188_v12  ;;  %v847_v10 = vmul.f32 %v2128_v6, %v2112_v41  ;;  %v1497_v50 = vrot.slane %v2265_v9, %v1496_v49  ;;  %v1620_v6 = vld [vmem:[%s2517_s3] sm:$0xff] }
 0x3c7   :  { %2039 = vmatprep.mubr.msk.f32.mxu0 %vm2191_vm1, %v2188_v12  ;;  %2042 = vmatprep.subr.mxu1 %v2188_v12  ;;  %v845_v11 = vmul.f32 %v2130_v8, %v2385_v42  ;;  %v1718_v8 = vld [vmem:[%s2518_s4 + $0x38] sm:$0xff] }
 0x3c8   :  { %2040 = vmatmul.mubr.msk.f32.vlgmr.msra.gmra.mxu0 %vm147_vm2, %v847_v10  ;;  %2047 = vmatprep.subr.mxu0 %v1493_v22  ;;  %v1717_v10 = vld [vmem:[%s2518_s4 + $0x30] sm:$0xff] }
 0x3c9   :  { %2035 = vmatmul.mubr.msk.f32.vlgmr.msra.gmra.mxu1 %vm147_vm2, %v845_v11  ;;  %2048 = vmatpush3.msra.mxu0 %v1493_v22  ;;  %v1716_v11 = vld [vmem:[%s2518_s4 + $0x28] sm:$0xff]  ;;  %v1610_v22 = vsub.s32 2, %v2259_v7 }
 0x3ca   :  { %v2132_v14 = vpop.eup %2131  ;;  %2043 = vmatpush3.msra.mxu1 %v1383_v13  ;;  %2044 = vmatprep.mubr.msk.f32.mxu1 %vm2191_vm1, %v2188_v12  ;;  %v1491_v12 = vld [vmem:[%s2516_s2 + $0x8] sm:$0xff]  ;;  %v1715_v13 = vld [vmem:[%s2518_s4 + $0x20] sm:$0xff] }
 0x3cb   :  { %v849_v15 = vmul.f32 %v2132_v14, %v2390_v45  ;;  %2049 = vmatprep.subr.mxu0 %v1492_v23 }
 0x3cc   :  { %2050 = vmatpush3.msra.mxu0 %v1492_v23  ;;  %v1616_v23 = vsub.s32 3, %v2259_v7 }
 0x3cd   :  { %2045 = vmatmul.mubr.msk.f32.vlgmr.msra.gmra.mxu1 %vm147_vm2, %v849_v15  ;;  %2051 = vmatprep.subr.mxu0 %v1491_v12 }
 0x3ce   :  { %2052 = vmatpush3.msra.mxu0 %v1491_v12  ;;  %v1611_v12 = vrot.slane %v2265_v9, %v1610_v22 }
 0x3cf   :  { %2053 = vmatprep.subr.mxu0 %v1490_v25 }
 0x3d0   :  { %2054 = vmatpush3.msra.mxu0 %v1490_v25 }
 0x3d1   :  { %2069 = vmatprep.subr.mxu0 %v1718_v8 }
 0x428   :  { %v998_v16 = vpop.f32.mrf.mxu1 }
 0x42a   :  { %v2016_v17 = vpop.f32.mrf.mxu1 }
 0x42c   :  { %v922_v18 = vpop.f32.mrf.mxu0 }
 0x42e   :  { %v2011_v19 = vpop.f32.mrf.mxu0 }
 0x480   :  { %v1074_v24 = vpop.f32.mrf.mxu0 }
 0x481   :  { %1460 = vrot.lane.b32.xlu0 %v1074_v24, %s2187_s25 }
 0x482   :  { %v2021_v26 = vpop.f32.mrf.mxu0 }
 0x483   :  { %v1617_v26 = vrot.slane %v2265_v9, %v1616_v23 }
 0x484   :  { %v1226_v27 = vpop.f32.mrf.mxu0 }
 0x485   :  { %v1150_v28 = vpop.f32.mrf.mxu1  ;;  %1468 = vrot.lane.b32.xlu0 %v1226_v27, %s2195_s26 }
 0x486   :  { %1462 = vrot.lane.b32.xlu1 %v1150_v28, %s2187_s25  ;;  %v2031_v29 = vpop.f32.mrf.mxu0 }
 0x487   :  { %v2026_v30 = vpop.f32.mrf.mxu1 }
 0x488   :  { %v1378_v31 = vpop.f32.mrf.mxu0 }
 0x489   :  { %v1302_v32 = vpop.f32.mrf.mxu1  ;;  %1476 = vrot.lane.b32.xlu0 %v1378_v31, %s2196_s27 }
 0x48a   :  { %1470 = vrot.lane.b32.xlu1 %v1302_v32, %s2195_s26  ;;  %v2041_v33 = vpop.f32.mrf.mxu0 }
 0x48b   :  { %v2036_v34 = vpop.f32.mrf.mxu1  ;;  %v1714_v33 = vld [vmem:[%s2518_s4 + $0x18] sm:$0xff] }
 0x48c   :  { %v1713_v34 = vld [vmem:[%s2518_s4 + $0x10] sm:$0xff] }
 0x48d   :  { %v1454_v35 = vpop.f32.mrf.mxu1 }
 0x48e   :  { %1478 = vrot.lane.b32.xlu1 %v1454_v35, %s2196_s27  ;;  %v1712_v35 = vld [vmem:[%s2518_s4 + $0x8] sm:$0xff] }
 0x48f   :  { %v2046_v36 = vpop.f32.mrf.mxu1 }
 0x490   :  { %v1711_v36 = vld [vmem:[%s2518_s4] sm:$0xff]  ;;  %s2197_s4 = smov [#allocation5]  }
 0x491   :  { %s1852_s23 = sshll.u32 %s2197_s4, 4  ;;  %s1853_s23 = int_to_ptr.vmem [resolvable:$true] %s1852_s23 }
 0x492   :  { %s2161_s26 = scalar_lea.vmem %s1853_s23, 256  ;;  %p2166_p6 = scmp.lt.s32.totalorder %s1853_s23, %s1853_s23 }
 0x493   :  { %p2162_p5 = scmp.ne.s32.totalorder %s1853_s23, %s2161_s26  ;;  %p2167_p7 = scmp.lt.s32.totalorder %s2161_s26, %s2161_s26 }
 0x495   :  { %p2168_p8 = por %p2167_p7, %p2166_p6 }
 0x497   :  { %p2169_p9 = pnand %p2168_p8, %p2162_p5 }
 0x4f3   :  { %v1461_v37 = vpop.permute.xlu0 %1460 }
 0x4f4   :  { %v1482_v40 = vsel %vm147_vm2, %v922_v18, %v1461_v37  ;;  %v1626_v37 = vsub.s32 4, %v2259_v7 }
 0x4f7   :  { %v1469_v38 = vpop.permute.xlu0 %1468 }
 0x4f8   :  { %v1463_v39 = vpop.permute.xlu1 %1462  ;;  %v1485_v41 = vsel %vm1484_vm3, %v1482_v40, %v1469_v38  ;;  %v1627_v38 = vrot.slane %v2265_v9, %v1626_v37 }
 0x4f9   :  { %v1483_v45 = vsel %vm147_vm2, %v998_v16, %v1463_v39 }
 0x4fb   :  { %v1477_v42 = vpop.permute.xlu0 %1476 }
 0x4fc   :  { %v1471_v43 = vpop.permute.xlu1 %1470  ;;  %v1488_v44 = vsel %vm1487_vm4, %v1485_v41, %v1477_v42 }
 0x4fd   :  { %2055 = vmatprep.mubr.msk.f32.mxu0 %vm49_vm0, %v1488_v44  ;;  %v1486_v46 = vsel %vm1484_vm3, %v1483_v45, %v1471_v43  ;;  %v1721_v45 = vsub.s32 5, %v2259_v7 }
 0x500   :  { %v1479_v47 = vpop.permute.xlu1 %1478 }
 0x501   :  { %v1489_v48 = vsel %vm1487_vm4, %v1486_v46, %v1479_v47  ;;  %v1722_v46 = vrot.slane %v2265_v9, %v1721_v45 }
 0x502   :  { %2056 = vmatmul.mubr.msk.f32.vlgmr.msra.gmra.mxu0 %vm49_vm0, %v1489_v48 }
 0x503   :  { %2070 = vmatpush3.msra.mxu0 %v1718_v8 }
 0x504   :  { %2071 = vmatprep.subr.mxu0 %v1717_v10 }
 0x505   :  { %2072 = vmatpush3.msra.mxu0 %v1717_v10 }
 0x506   :  { %2073 = vmatprep.subr.mxu0 %v1716_v11 }
 0x507   :  { %2074 = vmatpush3.msra.mxu0 %v1716_v11 }
 0x508   :  { %2075 = vmatprep.subr.mxu0 %v1715_v13 }
 0x509   :  { %2076 = vmatpush3.msra.mxu0 %v1715_v13 }
 0x50a   :  { %2077 = vmatprep.subr.mxu0 %v1714_v33 }
 0x50b   :  { %2078 = vmatpush3.msra.mxu0 %v1714_v33 }
 0x50c   :  { %2079 = vmatprep.subr.mxu0 %v1713_v34 }
 0x50d   :  { %2080 = vmatpush3.msra.mxu0 %v1713_v34 }
 0x50e   :  { %2081 = vmatprep.subr.mxu0 %v1712_v35 }
 0x50f   :  { %2082 = vmatpush3.msra.mxu0 %v1712_v35 }
 0x510   :  { %2083 = vmatprep.subr.mxu0 %v1711_v36 }
 0x511   :  { %2084 = vmatpush3.msra.mxu0 %v1711_v36 }
 0x5c2   :  { %v2057_v51 = vpop.f32.mrf.mxu0 }
 0x5c3   :  { %v1576_v52 = vadd.f32 %v2057_v51, %v1497_v50 }
 0x5c4   :  { %v1570_v53 = vpop.f32.mrf.mxu0 }
 0x5c5   :  { %v1571_v54 = vadd.f32 %v1570_v53, %v1497_v50  ;;  %v1580_v55 = vadd.f32 %v1576_v52, %v2255_v5 }
 0x5c7   :  { %v1584_v20 = vsel %vm49_vm0, %v1580_v55, 0.0  ;;  %v1579_v21 = vadd.f32 %v1571_v54, %v2245_v2  ;;  %v1623_v2 = vld [vmem:[%s2517_s3 + $0x18] sm:$0xff] }
 0x5c8   :  { %1585 = vadd.xlane.f32.xlu1 %v1584_v20  ;;  %2058 = vmatprep.subr.mxu1 %v1623_v2 }
 0x5c9   :  { %v1581_v56 = vsel %vm49_vm0, %v1579_v21, 0.0  ;;  %2059 = vmatpush3.msra.mxu1 %v1623_v2 }
 0x5ca   :  { %1582 = vadd.xlane.f32.xlu0 %v1581_v56  ;;  %2060 = vmatprep.subr.mxu1 %v1622_v3 }
 0x5cb   :  { %2061 = vmatpush3.msra.mxu1 %v1622_v3 }
 0x5cc   :  { %2062 = vmatprep.subr.mxu1 %v1621_v4 }
 0x5cd   :  { %2063 = vmatpush3.msra.mxu1 %v1621_v4  ;;  %v1835_v4 = vsub.s32 6, %v2259_v7 }
 0x5ce   :  { %2064 = vmatprep.subr.mxu1 %v1620_v6 }
 0x5cf   :  { %2065 = vmatpush3.msra.mxu1 %v1620_v6  ;;  %v1841_v6 = vsub.s32 7, %v2259_v7  ;;  %v1836_v8 = vrot.slane %v2265_v9, %v1835_v4 }
 0x5d1   :  { %v1842_v13 = vrot.slane %v2265_v9, %v1841_v6 }
 0x651   :  { %v1586_v57 = vpop.xlane.xlu1 %1585 }
 0x652   :  { %v1589_v58 = vmul.f32 0.03125, %v1586_v57 }
 0x653   :  { %v1583_v59 = vpop.xlane.xlu0 %1582 }
 0x654   :  { %v1588_v60 = vmul.f32 0.03125, %v1583_v59  ;;  %v1591_v61 = vsub.f32 %v1580_v55, %v1589_v58 }
 0x656   :  { %v1590_v62 = vsub.f32 %v1579_v21, %v1588_v60  ;;  %v1593_v1 = vmul.f32 %v1591_v61, %v1591_v61 }
 0x658   :  { %v1592_v63 = vmul.f32 %v1590_v62, %v1590_v62  ;;  %v1597_v5 = vsel %vm49_vm0, %v1593_v1, 0.0 }
 0x65a   :  { %v1594_v0 = vsel %vm49_vm0, %v1592_v63, 0.0 }
 0x65b   :  { %1595 = vadd.xlane.f32.xlu0 %v1594_v0 }
 0x65f   :  { %1598 = vadd.xlane.f32.xlu0 %v1597_v5 }
 0x6e4   :  { %v1596_v14 = vpop.xlane.xlu0 %1595 }
 0x6e5   :  { %v1600_v15 = vmul.f32 0.03125, %v1596_v14 }
 0x6e7   :  { %v1602_v16 = vadd.f32 1e-05, %v1600_v15 }
 0x6e8   :  { %v1599_v17 = vpop.xlane.xlu0 %1598 }
 0x6e9   :  { %2133 = vrsqrt.f32 %v1602_v16  ;;  %v1601_v18 = vmul.f32 0.03125, %v1599_v17 }
 0x6eb   :  { %v1603_v19 = vadd.f32 1e-05, %v1601_v18 }
 0x6ed   :  { %2135 = vrsqrt.f32 %v1603_v19 }
 0x6f6   :  { %v2134_v24 = vpop.eup %2133 }
 0x6f7   :  { %v1606_v25 = vmul.f32 %v2134_v24, %v1590_v62 }
 0x6f9   :  { %v1612_v27 = vmul.f32 %v1611_v12, %v1606_v25 }
 0x6fa   :  { %v2136_v28 = vpop.eup %2135 }
 0x6fb   :  { %v1607_v29 = vmul.f32 %v2136_v28, %v1591_v61  ;;  %v1618_v30 = vadd.f32 %v1617_v26, %v1612_v27 }
 0x6fd   :  { %v1613_v31 = vmul.f32 %v1611_v12, %v1607_v29  ;;  %2066 = vmatprep.mubr.msk.f32.mxu1 %vm49_vm0, %v1618_v30 }
 0x6ff   :  { %v1619_v32 = vadd.f32 %v1617_v26, %v1613_v31 }
 0x701   :  { %2067 = vmatmul.mubr.msk.f32.vlgmr.msra.gmra.mxu1 %vm49_vm0, %v1619_v32 }
 0x7c1   :  { %v2068_v39 = vpop.f32.mrf.mxu1 }
 0x7c2   :  { %v1706_v40 = vadd.f32 %v2068_v39, %v1627_v38 }
 0x7c3   :  { %v1700_v41 = vpop.f32.mrf.mxu1 }
 0x7c4   :  { %v1701_v42 = vadd.f32 %v1700_v41, %v1627_v38  ;;  %v1710_v44 = vmax.f32 %v1706_v40, 0.0 }
 0x7c6   :  { %v1709_v43 = vmax.f32 %v1701_v42, 0.0 }
 0x7c8   :  { %2085 = vmatprep.mubr.msk.f32.mxu0 %vm1723_vm5, %v1709_v43 }
 0x7c9   :  { %2086 = vmatmul.mubr.msk.f32.vlgmr.msra.gmra.mxu0 %vm1723_vm5, %v1710_v44 }
 0x889   :  { %v2087_v47 = vpop.f32.mrf.mxu0 }
 0x88a   :  { %v1802_v48 = vadd.f32 %v2087_v47, %v1722_v46 }
 0x88b   :  { %v1796_v49 = vpop.f32.mrf.mxu0 }
 0x88c   :  { %v1797_v50 = vadd.f32 %v1796_v49, %v1722_v46  ;;  %v1806_v51 = vadd.f32 %v1802_v48, %v1619_v32 }
 0x88e   :  { %v1810_v52 = vsel %vm49_vm0, %v1806_v51, 0.0  ;;  %v1805_v53 = vadd.f32 %v1797_v50, %v1618_v30 }
 0x88f   :  { %1811 = vadd.xlane.f32.xlu0 %v1810_v52 }
 0x890   :  { %v1807_v54 = vsel %vm49_vm0, %v1805_v53, 0.0 }
 0x891   :  { %1808 = vadd.xlane.f32.xlu1 %v1807_v54 }
 0x918   :  { %v1812_v55 = vpop.xlane.xlu0 %1811 }
 0x919   :  { %v1814_v20 = vmul.f32 0.03125, %v1812_v55 }
 0x91a   :  { %v1809_v21 = vpop.xlane.xlu1 %1808 }
 0x91b   :  { %v1816_v56 = vsub.f32 %v1806_v51, %v1814_v20  ;;  %v1813_v57 = vmul.f32 0.03125, %v1809_v21 }
 0x91d   :  { %v1815_v58 = vsub.f32 %v1805_v53, %v1813_v57  ;;  %v1818_v59 = vmul.f32 %v1816_v56, %v1816_v56 }
 0x91f   :  { %v1822_v60 = vsel %vm49_vm0, %v1818_v59, 0.0  ;;  %v1817_v61 = vmul.f32 %v1815_v58, %v1815_v58 }
 0x920   :  { %1823 = vadd.xlane.f32.xlu0 %v1822_v60 }
 0x921   :  { %v1819_v62 = vsel %vm49_vm0, %v1817_v61, 0.0 }
 0x922   :  { %1820 = vadd.xlane.f32.xlu1 %v1819_v62 }
 0x9a9   :  { %v1824_v63 = vpop.xlane.xlu0 %1823 }
 0x9aa   :  { %v1826_v0 = vmul.f32 0.03125, %v1824_v63 }
 0x9ab   :  { %v1821_v1 = vpop.xlane.xlu1 %1820 }
 0x9ac   :  { %v1828_v5 = vadd.f32 1e-05, %v1826_v0  ;;  %v1825_v2 = vmul.f32 0.03125, %v1821_v1 }
 0x9ae   :  { %2137 = vrsqrt.f32 %v1828_v5  ;;  %v1827_v3 = vadd.f32 1e-05, %v1825_v2 }
 0x9b0   :  { %2139 = vrsqrt.f32 %v1827_v3 }
 0x9bb   :  { %v2138_v10 = vpop.eup %2137 }
 0x9bc   :  { %v1832_v11 = vmul.f32 %v2138_v10, %v1816_v56 }
 0x9bd   :  { %v2140_v14 = vpop.eup %2139 }
 0x9be   :  { %v1831_v15 = vmul.f32 %v2140_v14, %v1815_v58  ;;  %v1838_v16 = vmul.f32 %v1836_v8, %v1832_v11 }
 0x9c0   :  { %v1837_v17 = vmul.f32 %v1836_v8, %v1831_v15  ;;  %v1844_v18 = vadd.f32 %v1842_v13, %v1838_v16 }
 0x9c2   :  { %v1843_v19 = vadd.f32 %v1842_v13, %v1837_v17  ;;  %1846 = vst.msk [vmem:[#allocation5 + $0x8] sm:$0xff] %vm49_vm0, %v1844_v18 }
 0x9c4   :  { %1845 = vst.msk [vmem:[#allocation5] sm:$0xff] %vm49_vm0, %v1843_v19 }
 0x9c5   :  { %2172 = shalt.err (!%p2169_p9)
}
 0x9c6   :  { %1858 = dma.vmem_to_hbm [thread:$0]  %s1853_s23, 256, %s2520_s6, [#allocation4], %s2186_s24, %s2186_s24, %s2187_s25  }
 0x9c7   :  { %2183 = dma.done.wait [#allocation4], 256  }
 0x9c8   :  { %2184 = vsyncadd [#allocation4], 4294967040 }
 0x9c9   :  { %1862 = vsyncpa [#allocation3], 1 }
 0x9ca   :  { %1863 = vsyncpa [#allocation4], 1 }

</bundles_post_ra>
